<compile_context>
chip_gen: v6e
topology: v6e:2x2x1
jax: 0.10.0
libtpu: 0.0.40
codegen_flags: <defaults>
</compile_context>

<pallas_src>
import jax
import jax.numpy as jnp
from jax.experimental import pallas as pl
from jax.experimental.pallas import tpu as pltpu

SUBLANE = 8  # sublane width of a vreg (second-to-last dim)


def _round_up(n, m):
    return ((n + m - 1) // m) * m


def _cdiv(a, b):
    return -(-a // b)


def mlp_softmax_kernel(x_ref,
                       w1_ref, b1_ref,
                       w2_ref, b2_ref,
                       w3_ref, b3_ref,
                       w4_ref, b4_ref,
                       o_ref):
    """One batch tile: 3x (matmul + bias + ReLU), matmul + bias, stable softmax."""
    x = x_ref[...]

    h = jnp.dot(x, w1_ref[...], preferred_element_type=jnp.float32) + b1_ref[...]
    h = jnp.maximum(h, 0.0)

    h = jnp.dot(h, w2_ref[...], preferred_element_type=jnp.float32) + b2_ref[...]
    h = jnp.maximum(h, 0.0)

    h = jnp.dot(h, w3_ref[...], preferred_element_type=jnp.float32) + b3_ref[...]
    h = jnp.maximum(h, 0.0)

    logits = jnp.dot(h, w4_ref[...], preferred_element_type=jnp.float32) + b4_ref[...]

    # Numerically stable softmax over the (narrow) real output columns.
    m = jnp.max(logits, axis=-1, keepdims=True)
    e = jnp.exp(logits - m)
    denom = jnp.sum(e, axis=-1, keepdims=True)
    o_ref[...] = (e / denom).astype(o_ref.dtype)


def play_model_forward(x, params, *, block_b=1024):
    """x: (B, input_size) f32. params: dict of (in,out) weights + (1,out) biases."""
    B, in_dim = x.shape
    hid = params["w1"].shape[1]
    out_dim = params["w4"].shape[1]
    f32 = jnp.float32

    # --- batch tiling -------------------------------------------------------
    # n_steps chosen so (a) tiles are <= block_b rows, (b) there are >= 2
    # parallel grid steps when the batch is big enough (feeds both TCs on
    # v7x), (c) padding waste is bounded to < SUBLANE rows per step.
    n_steps = max(_cdiv(B, block_b), 1)
    if B > 2 * SUBLANE:
        n_steps = max(n_steps, 2)
    bt = _round_up(_cdiv(B, n_steps), SUBLANE)
    n_steps = _cdiv(B, bt)
    b_pad = bt * n_steps

    xp = x.astype(f32)
    if b_pad != B:
        # Tiny (16 B/row) zero-pad so tail rows are well-defined (no NaNs).
        xp = jnp.zeros((b_pad, in_dim), f32).at[:B].set(xp)

    w1 = params["w1"].astype(f32); b1 = params["b1"].astype(f32)
    w2 = params["w2"].astype(f32); b2 = params["b2"].astype(f32)
    w3 = params["w3"].astype(f32); b3 = params["b3"].astype(f32)
    w4 = params["w4"].astype(f32); b4 = params["b4"].astype(f32)

    const = lambda i: (0, 0)   # weights/biases stay resident across grid steps

    flops = 2 * b_pad * (in_dim * hid + 2 * hid * hid + hid * out_dim)
    bytes_accessed = 4 * (b_pad * in_dim + b_pad * out_dim
                          + in_dim * hid + 2 * hid * hid + hid * out_dim
                          + 3 * hid + out_dim)

    out = pl.pallas_call(
        mlp_softmax_kernel,
        out_shape=jax.ShapeDtypeStruct((b_pad, out_dim), jnp.float32),
        grid=(n_steps,),
        in_specs=[
            pl.BlockSpec((bt, in_dim), lambda i: (i, 0)),      # x: streamed, natural width
            pl.BlockSpec((in_dim, hid), const), pl.BlockSpec((1, hid), const),
            pl.BlockSpec((hid, hid), const),    pl.BlockSpec((1, hid), const),
            pl.BlockSpec((hid, hid), const),    pl.BlockSpec((1, hid), const),
            pl.BlockSpec((hid, out_dim), const), pl.BlockSpec((1, out_dim), const),
        ],
        out_specs=pl.BlockSpec((bt, out_dim), lambda i: (i, 0)),  # natural-width store
        compiler_params=pltpu.CompilerParams(
            dimension_semantics=("parallel",)),                   # megacore on v7x
        cost_estimate=pl.CostEstimate(
            flops=flops,
            transcendentals=b_pad * out_dim,
            bytes_accessed=bytes_accessed),
    )(xp, w1, b1, w2, b2, w3, b3, w4, b4)

    return out[:B] if b_pad != B else out


def init_params(key, input_size, hidden_size, output_size):
    """Mimic PyTorch nn.Linear default init: U(-1/sqrt(fan_in), 1/sqrt(fan_in))."""
    dims = [(input_size, hidden_size),
            (hidden_size, hidden_size),
            (hidden_size, hidden_size),
            (hidden_size, output_size)]
    params = {}
    for i, (fan_in, fan_out) in enumerate(dims, start=1):
        key, kw, kb = jax.random.split(key, 3)
        bound = 1.0 / jnp.sqrt(jnp.float32(fan_in))
        params[f"w{i}"] = jax.random.uniform(
            kw, (fan_in, fan_out), jnp.float32, minval=-bound, maxval=bound)
        params[f"b{i}"] = jax.random.uniform(
            kb, (1, fan_out), jnp.float32, minval=-bound, maxval=bound)
    return params


def reference_forward(x, params):
    h = jnp.maximum(x @ params["w1"] + params["b1"], 0.0)
    h = jnp.maximum(h @ params["w2"] + params["b2"], 0.0)
    h = jnp.maximum(h @ params["w3"] + params["b3"], 0.0)
    logits = h @ params["w4"] + params["b4"]
    return jax.nn.softmax(logits, axis=-1)


if __name__ == "__main__":
    # PlayModel.predict feeds [x, y, vx, vy] -> input_size = 4, output_size = 2.
    input_size, hidden_size, output_size = 4, 32, 2

    key = jax.random.PRNGKey(0)
    key, kx, kx2 = jax.random.split(key, 3)
    params = init_params(key, input_size, hidden_size, output_size)

    ATOL = 2e-3  # TPU default matmul precision (bf16 passes) in both paths

    # 1) Small batch (single grid step).
    batch = 8
    x = jax.random.normal(kx, (batch, input_size), jnp.float32)
    out = jax.block_until_ready(play_model_forward(x, params))
    ref = reference_forward(x, params)
    assert out.shape == (batch, output_size)
    assert jnp.allclose(out, ref, atol=ATOL, rtol=ATOL), "mismatch vs reference (small batch)"
    assert jnp.allclose(jnp.sum(out, axis=-1), 1.0, atol=1e-5)

    # 2) Larger, non-tile-multiple batch to exercise the batch grid + padding
    #    (with the default large batch tile; grid has >= 2 parallel steps).
    big_batch = 600
    x2 = jax.random.normal(kx2, (big_batch, input_size), jnp.float32)
    out2 = jax.block_until_ready(play_model_forward(x2, params))
    ref2 = reference_forward(x2, params)
    assert out2.shape == (big_batch, output_size)
    assert jnp.allclose(out2, ref2, atol=ATOL, rtol=ATOL), "mismatch vs reference (gridded batch)"
    assert jnp.allclose(jnp.sum(out2, axis=-1), 1.0, atol=1e-5)

    print("KERNEL_OK")
</pallas_src>

<mosaic_0001>
module attributes {stable_mosaic.version = 11 : i64} {
  func.func @mlp_softmax_kernel(%arg0: i32, %arg1: memref<8x4xf32, #tpu.memory_space<vmem>>, %arg2: memref<4x32xf32, #tpu.memory_space<vmem>>, %arg3: memref<1x32xf32, #tpu.memory_space<vmem>>, %arg4: memref<32x32xf32, #tpu.memory_space<vmem>>, %arg5: memref<1x32xf32, #tpu.memory_space<vmem>>, %arg6: memref<32x32xf32, #tpu.memory_space<vmem>>, %arg7: memref<1x32xf32, #tpu.memory_space<vmem>>, %arg8: memref<32x2xf32, #tpu.memory_space<vmem>>, %arg9: memref<1x2xf32, #tpu.memory_space<vmem>>, %arg10: memref<8x2xf32, #tpu.memory_space<vmem>>) attributes {dimension_semantics = [#tpu.dimension_semantics<parallel>], iteration_bounds = array<i64: 1>, scalar_prefetch = 0 : i64, scratch_operands = 0 : i64, tpu.core_type = #tpu.core_type<tc>, window_params = [{transform_indices = @transform_0, window_bounds = array<i64: 8, 4>}, {pipeline_mode = #tpu.pipeline_mode<synchronous>, transform_indices = @transform_1, window_bounds = array<i64: 4, 32>}, {pipeline_mode = #tpu.pipeline_mode<synchronous>, transform_indices = @transform_2, window_bounds = array<i64: 1, 32>}, {pipeline_mode = #tpu.pipeline_mode<synchronous>, transform_indices = @transform_3, window_bounds = array<i64: 32, 32>}, {pipeline_mode = #tpu.pipeline_mode<synchronous>, transform_indices = @transform_4, window_bounds = array<i64: 1, 32>}, {pipeline_mode = #tpu.pipeline_mode<synchronous>, transform_indices = @transform_5, window_bounds = array<i64: 32, 32>}, {pipeline_mode = #tpu.pipeline_mode<synchronous>, transform_indices = @transform_6, window_bounds = array<i64: 1, 32>}, {pipeline_mode = #tpu.pipeline_mode<synchronous>, transform_indices = @transform_7, window_bounds = array<i64: 32, 2>}, {pipeline_mode = #tpu.pipeline_mode<synchronous>, transform_indices = @transform_8, window_bounds = array<i64: 1, 2>}, {transform_indices = @transform_9, window_bounds = array<i64: 8, 2>}]} {
    %c0 = arith.constant 0 : index
    %c0_0 = arith.constant 0 : index
    %0 = vector.load %arg1[%c0, %c0_0] : memref<8x4xf32, #tpu.memory_space<vmem>>, vector<8x4xf32>
    %c0_1 = arith.constant 0 : index
    %c0_2 = arith.constant 0 : index
    %1 = vector.load %arg2[%c0_1, %c0_2] : memref<4x32xf32, #tpu.memory_space<vmem>>, vector<4x32xf32>
    %cst = arith.constant dense<0.000000e+00> : vector<8x32xf32>
    %2 = tpu.matmul %0, %1, %cst {dimension_numbers = #tpu.dot_dimension_numbers<[1], [0], [0], [1], [0, 0, 1, 1], [], []>} : vector<8x4xf32>, vector<4x32xf32>, vector<8x32xf32> -> vector<8x32xf32>
    %c0_3 = arith.constant 0 : index
    %c0_4 = arith.constant 0 : index
    %3 = vector.load %arg3[%c0_3, %c0_4] : memref<1x32xf32, #tpu.memory_space<vmem>>, vector<1x32xf32>
    %4 = vector.broadcast %3 : vector<1x32xf32> to vector<8x32xf32>
    %5 = arith.addf %2, %4 : vector<8x32xf32>
    %cst_5 = arith.constant 0.000000e+00 : f32
    %6 = vector.broadcast %cst_5 : f32 to vector<8x32xf32>
    %7 = arith.maximumf %5, %6 : vector<8x32xf32>
    %c0_6 = arith.constant 0 : index
    %c0_7 = arith.constant 0 : index
    %8 = vector.load %arg4[%c0_6, %c0_7] : memref<32x32xf32, #tpu.memory_space<vmem>>, vector<32x32xf32>
    %cst_8 = arith.constant dense<0.000000e+00> : vector<8x32xf32>
    %9 = tpu.matmul %7, %8, %cst_8 {dimension_numbers = #tpu.dot_dimension_numbers<[1], [0], [0], [1], [0, 0, 1, 1], [], []>} : vector<8x32xf32>, vector<32x32xf32>, vector<8x32xf32> -> vector<8x32xf32>
    %c0_9 = arith.constant 0 : index
    %c0_10 = arith.constant 0 : index
    %10 = vector.load %arg5[%c0_9, %c0_10] : memref<1x32xf32, #tpu.memory_space<vmem>>, vector<1x32xf32>
    %11 = vector.broadcast %10 : vector<1x32xf32> to vector<8x32xf32>
    %12 = arith.addf %9, %11 : vector<8x32xf32>
    %cst_11 = arith.constant 0.000000e+00 : f32
    %13 = vector.broadcast %cst_11 : f32 to vector<8x32xf32>
    %14 = arith.maximumf %12, %13 : vector<8x32xf32>
    %c0_12 = arith.constant 0 : index
    %c0_13 = arith.constant 0 : index
    %15 = vector.load %arg6[%c0_12, %c0_13] : memref<32x32xf32, #tpu.memory_space<vmem>>, vector<32x32xf32>
    %cst_14 = arith.constant dense<0.000000e+00> : vector<8x32xf32>
    %16 = tpu.matmul %14, %15, %cst_14 {dimension_numbers = #tpu.dot_dimension_numbers<[1], [0], [0], [1], [0, 0, 1, 1], [], []>} : vector<8x32xf32>, vector<32x32xf32>, vector<8x32xf32> -> vector<8x32xf32>
    %c0_15 = arith.constant 0 : index
    %c0_16 = arith.constant 0 : index
    %17 = vector.load %arg7[%c0_15, %c0_16] : memref<1x32xf32, #tpu.memory_space<vmem>>, vector<1x32xf32>
    %18 = vector.broadcast %17 : vector<1x32xf32> to vector<8x32xf32>
    %19 = arith.addf %16, %18 : vector<8x32xf32>
    %cst_17 = arith.constant 0.000000e+00 : f32
    %20 = vector.broadcast %cst_17 : f32 to vector<8x32xf32>
    %21 = arith.maximumf %19, %20 : vector<8x32xf32>
    %c0_18 = arith.constant 0 : index
    %c0_19 = arith.constant 0 : index
    %22 = vector.load %arg8[%c0_18, %c0_19] : memref<32x2xf32, #tpu.memory_space<vmem>>, vector<32x2xf32>
    %cst_20 = arith.constant dense<0.000000e+00> : vector<8x2xf32>
    %23 = tpu.matmul %21, %22, %cst_20 {dimension_numbers = #tpu.dot_dimension_numbers<[1], [0], [0], [1], [0, 0, 1, 1], [], []>} : vector<8x32xf32>, vector<32x2xf32>, vector<8x2xf32> -> vector<8x2xf32>
    %c0_21 = arith.constant 0 : index
    %c0_22 = arith.constant 0 : index
    %24 = vector.load %arg9[%c0_21, %c0_22] : memref<1x2xf32, #tpu.memory_space<vmem>>, vector<1x2xf32>
    %25 = vector.broadcast %24 : vector<1x2xf32> to vector<8x2xf32>
    %26 = arith.addf %23, %25 : vector<8x2xf32>
    %cst_23 = arith.constant dense<0xFF800000> : vector<8xf32>
    %27 = vector.multi_reduction <maximumf>, %26, %cst_23 [1] : vector<8x2xf32> to vector<8xf32>
    %28 = vector.shape_cast %27 : vector<8xf32> to vector<8x1xf32>
    %29 = vector.broadcast %28 : vector<8x1xf32> to vector<8x2xf32>
    %30 = arith.subf %26, %29 : vector<8x2xf32>
    %31 = math.exp %30 : vector<8x2xf32>
    %cst_24 = arith.constant dense<0.000000e+00> : vector<8xf32>
    %32 = vector.multi_reduction <add>, %31, %cst_24 [1] : vector<8x2xf32> to vector<8xf32>
    %33 = vector.shape_cast %32 : vector<8xf32> to vector<8x1xf32>
    %34 = vector.broadcast %33 : vector<8x1xf32> to vector<8x2xf32>
    %35 = arith.divf %31, %34 : vector<8x2xf32>
    %c0_25 = arith.constant 0 : index
    %c0_26 = arith.constant 0 : index
    %36 = vector.load %arg10[%c0_25, %c0_26] : memref<8x2xf32, #tpu.memory_space<vmem>>, vector<8x2xf32>
    tpu.vector_store %arg10[%c0_25, %c0_26], %35 {strides = array<i32>} : memref<8x2xf32, #tpu.memory_space<vmem>>, vector<8x2xf32>,
    return
  }
  func.func @transform_0(%arg0: i32) -> (i32, i32) {
    %c0_i32 = arith.constant 0 : i32
    %c0_i32_0 = arith.constant 0 : i32
    return %arg0, %c0_i32 : i32, i32
  }
  func.func @transform_1(%arg0: i32) -> (i32, i32) {
    %c0_i32 = arith.constant 0 : i32
    %c0_i32_0 = arith.constant 0 : i32
    %c0_i32_1 = arith.constant 0 : i32
    return %c0_i32, %c0_i32_0 : i32, i32
  }
  func.func @transform_2(%arg0: i32) -> (i32, i32) {
    %c0_i32 = arith.constant 0 : i32
    %c0_i32_0 = arith.constant 0 : i32
    %c0_i32_1 = arith.constant 0 : i32
    return %c0_i32, %c0_i32_0 : i32, i32
  }
  func.func @transform_3(%arg0: i32) -> (i32, i32) {
    %c0_i32 = arith.constant 0 : i32
    %c0_i32_0 = arith.constant 0 : i32
    %c0_i32_1 = arith.constant 0 : i32
    return %c0_i32, %c0_i32_0 : i32, i32
  }
  func.func @transform_4(%arg0: i32) -> (i32, i32) {
    %c0_i32 = arith.constant 0 : i32
    %c0_i32_0 = arith.constant 0 : i32
    %c0_i32_1 = arith.constant 0 : i32
    return %c0_i32, %c0_i32_0 : i32, i32
  }
  func.func @transform_5(%arg0: i32) -> (i32, i32) {
    %c0_i32 = arith.constant 0 : i32
    %c0_i32_0 = arith.constant 0 : i32
    %c0_i32_1 = arith.constant 0 : i32
    return %c0_i32, %c0_i32_0 : i32, i32
  }
  func.func @transform_6(%arg0: i32) -> (i32, i32) {
    %c0_i32 = arith.constant 0 : i32
    %c0_i32_0 = arith.constant 0 : i32
    %c0_i32_1 = arith.constant 0 : i32
    return %c0_i32, %c0_i32_0 : i32, i32
  }
  func.func @transform_7(%arg0: i32) -> (i32, i32) {
    %c0_i32 = arith.constant 0 : i32
    %c0_i32_0 = arith.constant 0 : i32
    %c0_i32_1 = arith.constant 0 : i32
    return %c0_i32, %c0_i32_0 : i32, i32
  }
  func.func @transform_8(%arg0: i32) -> (i32, i32) {
    %c0_i32 = arith.constant 0 : i32
    %c0_i32_0 = arith.constant 0 : i32
    %c0_i32_1 = arith.constant 0 : i32
    return %c0_i32, %c0_i32_0 : i32, i32
  }
  func.func @transform_9(%arg0: i32) -> (i32, i32) {
    %c0_i32 = arith.constant 0 : i32
    %c0_i32_0 = arith.constant 0 : i32
    return %arg0, %c0_i32 : i32, i32
  }
}

</mosaic_0001>

<bundles_post_ra>
// kernel: tpu_custom_call.1
= control target key start
LH: loop header
LB: loop body
LE: loop exit
PB: predicated region body
PF: predicated region fallthrough
CT: control target
= control target key end

     0   :  { %14 = vsyncpa [#allocation3], 0  ;;  %s502_s30 = smov [#allocation2]   ;;  %s615_s0 = inlined_call_operand.vmem [shape: f32[8,4], index: 0, kind: input, shape index: {}]   ;;  %s616_s1 = inlined_call_operand.vmem [shape: f32[4,32], index: 1, kind: input, shape index: {}]   ;;  %s617_s2 = inlined_call_operand.vmem [shape: f32[1,32], index: 2, kind: input, shape index: {}]   ;;  %s618_s3 = inlined_call_operand.vmem [shape: f32[32,32], index: 3, kind: input, shape index: {}]   ;;  %s619_s4 = inlined_call_operand.vmem [shape: f32[1,32], index: 4, kind: input, shape index: {}]   ;;  %s620_s5 = inlined_call_operand.hbm [shape: f32[32,32], index: 5, kind: input, shape index: {}]   ;;  %s621_s6 = inlined_call_operand.vmem [shape: f32[1,32], index: 6, kind: input, shape index: {}]   ;;  %s622_s7 = inlined_call_operand.vmem [shape: f32[32,2], index: 7, kind: input, shape index: {}]   ;;  %s623_s8 = inlined_call_operand.vmem [shape: f32[1,2], index: 8, kind: input, shape index: {}]   ;;  %s624_s9 = inlined_call_operand.vmem [shape: f32[8,2], index: 9, kind: output, shape index: {}]  }
   0x1   :  { %s30_s10 = sshll.u32 %s502_s30, 4  ;;  %s31_s10 = int_to_ptr.vmem [resolvable:$true] %s30_s10 }
   0x2   :  { %s488_s11 = scalar_lea.vmem %s31_s10, 512  ;;  %p493_p1 = scmp.lt.s32.totalorder %s31_s10, %s31_s10 }
   0x3   :  { %p489_p0 = scmp.ne.s32.totalorder %s31_s10, %s488_s11  ;;  %p494_p2 = scmp.lt.s32.totalorder %s488_s11, %s488_s11 }
   0x5   :  { %p495_p3 = por %p494_p2, %p493_p1 }
   0x7   :  { %p496_p4 = pnand %p495_p3, %p489_p0 }
   0x9   :  { %499 = shalt.err (!%p496_p4)
}
   0xa   :  { %s503_s12 = smov 128   ;;  %s504_s13 = smov 8  }
   0xb   :  { %36 = dma.hbm_to_vmem [thread:$0]  %s620_s5, 512, %s31_s10, [#allocation3], %s503_s12, %s503_s12, %s504_s13  }
   0xc   :  { %500 = dma.done.wait [#allocation3], 512  }
   0xd   :  { %501 = vsyncadd [#allocation3], 4294966784  ;;  %v505_v0 = vmov 0.0   ;;  %vm506_vm0 = vmmov 0   ;;  %vm59_vm1 = vcmask 1043456   ;;  %vm55_vm2 = vcmask 31744  }
   0xe   :  { %433 = vmatprep.subr.mxu0 %v505_v0  ;;  %435 = vmatprep.mubr.msk.f32.mxu0 %vm506_vm0, %v505_v0  ;;  %v47_v1 = vld [vmem:[%s616_s1] sm:$0xf]  ;;  %v137_v3 = vld [vmem:[%s618_s3 + $0x18] sm:$0xff]  ;;  %v136_v4 = vld [vmem:[%s618_s3 + $0x10] sm:$0xff]  ;;  %vm145_vm3 = vcmask 261120   ;;  %vm389_vm4 = vcmask 15360  }
   0xf   :  { %438 = vmatprep.subr.mxu1 %v505_v0  ;;  %446 = vmatprep.mubr.msk.f32.mxu1 %vm506_vm0, %v505_v0  ;;  %v46_v2 = vld [vmem:[%s615_s0] sm:$0xff]  ;;  %v135_v5 = vld [vmem:[%s618_s3 + $0x8] sm:$0xff]  ;;  %v223_v7 = vld [vmem:[#allocation2 + $0x18] sm:$0xff] }
  0x10   :  { %434 = vmatpush3.msk.msra.mxu0 %vm59_vm1, %v47_v1  ;;  %439 = vmatpush3.msra.mxu1 %v137_v3  ;;  %v134_v6 = vld [vmem:[%s618_s3] sm:$0xff]  ;;  %v222_v13 = vld [vmem:[#allocation2 + $0x10] sm:$0xff]  ;;  %v221_v14 = vld [vmem:[#allocation2 + $0x8] sm:$0xff] }
  0x11   :  { %436 = vmatmul.mubr.msk.f32.vlgmr.msra.gmra.mxu0 %vm55_vm2, %v46_v2  ;;  %440 = vmatprep.subr.mxu1 %v505_v0  ;;  %v407_v8 = vld [vmem:[%s617_s2] ss:$0 sm:$0xff]  ;;  %v308_v16 = vld [vmem:[%s622_s7 + $0x18] sm:$0xff]  ;;  %v307_v22 = vld [vmem:[%s622_s7 + $0x10] sm:$0xff] }
  0x12   :  { %449 = vmatprep.subr.mxu0 %v505_v0  ;;  %457 = vmatprep.mubr.msk.f32.mxu0 %vm506_vm0, %v505_v0  ;;  %v220_v15 = vld [vmem:[#allocation2] sm:$0xff]  ;;  %v306_v23 = vld [vmem:[%s622_s7 + $0x8] sm:$0xff] }
  0x13   :  { %441 = vmatpush3.msra.mxu1 %v136_v4  ;;  %450 = vmatpush3.msra.mxu0 %v223_v7  ;;  %v410_v17 = vld [vmem:[%s619_s4] ss:$0 sm:$0xff] }
  0x14   :  { %442 = vmatprep.subr.mxu1 %v505_v0  ;;  %451 = vmatprep.subr.mxu0 %v505_v0  ;;  %v305_v24 = vld [vmem:[%s622_s7] sm:$0xff] }
  0x15   :  { %443 = vmatpush3.msra.mxu1 %v135_v5  ;;  %452 = vmatpush3.msra.mxu0 %v222_v13  ;;  %v412_v25 = vld [vmem:[%s621_s6] ss:$0 sm:$0xff] }
  0x16   :  { %444 = vmatprep.subr.mxu1 %v505_v0  ;;  %453 = vmatprep.subr.mxu0 %v505_v0  ;;  %v414_v30 = vld [vmem:[%s623_s8] ss:$0 sm:$0xff] }
  0x17   :  { %445 = vmatpush3.msra.mxu1 %v134_v6  ;;  %454 = vmatpush3.msra.mxu0 %v221_v14 }
  0x18   :  { %460 = vmatprep.subr.mxu1 %v505_v0  ;;  %455 = vmatprep.subr.mxu0 %v505_v0 }
  0x19   :  { %456 = vmatpush3.msra.mxu0 %v220_v15 }
  0xd1   :  { %v129_v9 = vpop.f32.mrf.mxu0 }
  0xd2   :  { %v130_v10 = vadd.f32 %v407_v8, %v129_v9 }
  0xd3   :  { %v437_v11 = vpop.f32.mrf.mxu0 }
  0xd4   :  { %v133_v12 = vmax.f32 %v130_v10, 0.0 }
  0xd6   :  { %447 = vmatmul.mubr.msk.f32.vlgmr.msra.gmra.mxu1 %vm145_vm3, %v133_v12 }
  0xd7   :  { %468 = vmatprep.mubr.msk.f32.mxu1 %vm506_vm0, %v505_v0  ;;  %461 = vmatpush3.msra.mxu1 %v308_v16 }
  0xd8   :  { %462 = vmatprep.subr.mxu1 %v505_v0 }
  0xd9   :  { %463 = vmatpush3.msra.mxu1 %v307_v22 }
  0xda   :  { %464 = vmatprep.subr.mxu1 %v505_v0 }
  0xdb   :  { %465 = vmatpush3.msra.mxu1 %v306_v23 }
  0xdc   :  { %466 = vmatprep.subr.mxu1 %v505_v0 }
  0xdd   :  { %467 = vmatpush3.msra.mxu1 %v305_v24 }
 0x196   :  { %v215_v18 = vpop.f32.mrf.mxu1 }
 0x197   :  { %v216_v19 = vadd.f32 %v410_v17, %v215_v18 }
 0x198   :  { %v448_v20 = vpop.f32.mrf.mxu1 }
 0x199   :  { %v219_v21 = vmax.f32 %v216_v19, 0.0 }
 0x19b   :  { %458 = vmatmul.mubr.msk.f32.vlgmr.msra.gmra.mxu0 %vm145_vm3, %v219_v21 }
 0x25b   :  { %v300_v26 = vpop.f32.mrf.mxu0 }
 0x25c   :  { %v301_v27 = vadd.f32 %v412_v25, %v300_v26 }
 0x25d   :  { %v459_v28 = vpop.f32.mrf.mxu0 }
 0x25e   :  { %v304_v29 = vmax.f32 %v301_v27, 0.0 }
 0x260   :  { %469 = vmatmul.mubr.msk.f32.vlgmr.msra.gmra.mxu1 %vm145_vm3, %v304_v29 }
 0x320   :  { %v385_v31 = vpop.f32.mrf.mxu1 }
 0x321   :  { %v386_v32 = vadd.f32 %v414_v30, %v385_v31 }
 0x322   :  { %v470_v33 = vpop.f32.mrf.mxu1 }
 0x323   :  { %v390_v34 = vsel %vm389_vm4, %v386_v32, -inf }
 0x324   :  { %391 = vmax.xlane.f32.xlu0 %v390_v34 }
 0x3ad   :  { %v392_v35 = vpop.xlane.xlu0 %391 }
 0x3ae   :  { %v393_v36 = vsub.f32 %v386_v32, %v392_v35 }
 0x3b0   :  { %v394_v37 = vmul.f32 1.442695, %v393_v36 }
 0x3b2   :  { %476 = vpow2.f32 %v394_v37 }
 0x3bf   :  { %v477_v38 = vpop.eup %476 }
 0x3c0   :  { %v396_v39 = vsel %vm389_vm4, %v477_v38, 0.0 }
 0x3c1   :  { %397 = vadd.xlane.f32.xlu0 %v396_v39 }
 0x44a   :  { %v398_v40 = vpop.xlane.xlu0 %397 }
 0x44b   :  { %478 = vrcp.f32 %v398_v40 }
 0x458   :  { %v479_v41 = vpop.eup %478 }
 0x459   :  { %v400_v42 = vmul.f32 %v479_v41, %v477_v38 }
 0x45b   :  { %401 = vst.msk [vmem:[%s624_s9] sm:$0xff] %vm389_vm4, %v400_v42 }
 0x45c   :  { %406 = vsyncpa [#allocation3], 1 }

</bundles_post_ra>
